<compile_context>
chip_gen: v7x
topology: tpu7x:2x2x1
jax: 0.10.0
libtpu: 0.0.40
codegen_flags: <defaults>
</compile_context>

<pallas_src>
import functools
import math

import jax
import jax.numpy as jnp
from jax import lax
from jax.experimental import pallas as pl
from jax.experimental.pallas import tpu as pltpu

LN_EPS = 1e-5
_LANE = 128      # channel axis padded to a multiple of this
_SUBLANE = 8     # row tile must be a multiple of this


def _cdiv(a, b):
    return (a + b - 1) // b


def _round_up(a, m):
    return _cdiv(a, m) * m


def _res_block_kernel(x_ref, gamma_ref, beta_ref, w1_ref, b1_ref, w2_ref,
                      b2_ref, o_ref, xn_ref, acc_ref, *, c_true, c_pad):
    # x_ref: (tm, c_pad) tile (original dtype).  w1_ref: (c_pad, tn) bf16,
    # w2_ref: (tn, c_pad) bf16, both already in (in, out) layout.
    # gamma/beta/b1/b2: f32 row vectors (zero in pad lanes).
    j = pl.program_id(1)

    @pl.when(j == 0)
    def _():
        # ---- LayerNorm over the true channel count (pad lanes of x are 0) ---
        x = x_ref[...].astype(jnp.float32)
        inv_c = 1.0 / c_true
        mean = jnp.sum(x, axis=-1, keepdims=True) * inv_c
        centered = x - mean
        if c_pad != c_true:
            # (1, c_pad) lane mask, broadcast by the select (no full-tile iota).
            lane = lax.broadcasted_iota(jnp.int32, (1, c_pad), 1)
            centered = jnp.where(lane < c_true, centered, 0.0)
        var = jnp.sum(centered * centered, axis=-1, keepdims=True) * inv_c
        xn = centered * lax.rsqrt(var + LN_EPS)
        # pad lanes: gamma = beta = 0  ->  xn == 0 there.
        xn_ref[...] = xn * gamma_ref[...] + beta_ref[...]
        acc_ref[...] = jnp.zeros_like(acc_ref)

    # ---- proj, one column strip at a time (bf16 MXU, f32 accumulate) --------
    xn_bf = xn_ref[...].astype(jnp.bfloat16)
    h = jnp.dot(xn_bf, w1_ref[...],
                preferred_element_type=jnp.float32) + b1_ref[...]
    # tanh-approx GELU -> EUP slot instead of an erf polynomial on the VALU.
    h = jax.nn.gelu(h, approximate=True)
    acc_ref[...] += jnp.dot(h.astype(jnp.bfloat16), w2_ref[...],
                            preferred_element_type=jnp.float32)

    @pl.when(j == pl.num_programs(1) - 1)
    def _():
        # ---- residual: x_norm + proj(x_norm) --------------------------------
        o_ref[...] = (xn_ref[...] + acc_ref[...] + b2_ref[...]).astype(o_ref.dtype)


def prepare_params(params, channels):
    """One-time conversion of PyTorch-layout params: transpose fc weights to
    (in, out), cast to bf16, zero-pad everything to the padded channel count.
    Cache/reuse the result across calls to avoid per-call HBM passes."""
    c_pad = _round_up(channels, _LANE)
    pc = c_pad - channels

    def vec(v):
        v = jnp.asarray(v, jnp.float32).reshape(1, channels)
        return jnp.pad(v, ((0, 0), (0, pc))) if pc else v

    def mat(w):  # PyTorch (out, in) -> (in, out), bf16, padded
        w = jnp.asarray(w, jnp.float32).T.astype(jnp.bfloat16)
        return jnp.pad(w, ((0, pc), (0, pc))) if pc else w

    return {
        "c": channels, "c_pad": c_pad,
        "gamma": vec(params["ln_w"]), "beta": vec(params["ln_b"]),
        "w1": mat(params["fc1_w"]), "b1": vec(params["fc1_b"]),
        "w2": mat(params["fc2_w"]), "b2": vec(params["fc2_b"]),
    }


def simple_res_block(x, params=None, *, prepared=None, tm=256, tn=None):
    """x: (..., C). params: raw PyTorch-layout weights, or pass a cached
    prepare_params(...) result via `prepared`. Returns same shape/dtype."""
    orig_shape, orig_dtype = x.shape, x.dtype
    c = x.shape[-1]
    if prepared is None:
        prepared = prepare_params(params, c)
    assert prepared["c"] == c, "prepared params do not match input channels"
    c_pad = prepared["c_pad"]

    # ---- device VMEM capacity (generation-aware limits/tiling) --------------
    try:
        vmem_cap = int(pltpu.get_tpu_info().vmem_capacity_bytes)
    except Exception:
        vmem_cap = 64 << 20  # conservative: v7x per-TensorCore VMEM

    # ---- row tiling: minimize padded rows, 256-target for the MXU -----------
    x2 = x.reshape(-1, c)
    rows = x2.shape[0]
    tm_target = max(tm, _SUBLANE)
    while tm_target > _SUBLANE and 24 * tm_target * c_pad > vmem_cap // 2:
        tm_target //= 2  # shrink activation footprint for very wide channels
    n_row_tiles = max(_cdiv(rows, tm_target), 1)
    tm_eff = _round_up(_cdiv(rows, n_row_tiles), _SUBLANE)
    rows_p = n_row_tiles * tm_eff
    # TODO(synk): replace the (small) row padding with a masked store on the
    # ragged last tile once that's worth the extra select.
    if rows_p != rows or c_pad != c:
        x2 = jnp.pad(x2, ((0, rows_p - rows), (0, c_pad - c)))

    # ---- weight strip width: resident if it fits, else stream strips --------
    if tn is None:
        budget = vmem_cap // 3
        if 8 * c_pad * c_pad <= budget:   # 2 weights * 2 buffers * bf16 bytes
            tn = c_pad
        else:
            tn = max((budget // (8 * c_pad)) // _LANE * _LANE, _LANE)
    tn = max(min(tn, c_pad), _LANE)
    while c_pad % tn != 0:               # keep strips an exact divisor
        tn -= _LANE
    tn = max(tn, _LANE)
    n_strips = c_pad // tn

    # ---- VMEM budget / cost hints -------------------------------------------
    in_bytes = x2.dtype.itemsize
    out_bytes = jnp.dtype(orig_dtype).itemsize
    est = (2 * tm_eff * c_pad * (in_bytes + out_bytes)   # double-buffered x/out
           + 2 * tm_eff * c_pad * 4                      # xn + acc scratch
           + 8 * c_pad * tn                              # bf16 weight strips x2 bufs
           + 4 * tm_eff * tn * 4                         # in-kernel temporaries
           + 16 * c_pad * 4)                             # bias vectors
    vmem_limit = int(min(max(2 * est, 32 << 20), int(vmem_cap * 0.85)))

    cost = pl.CostEstimate(
        flops=4 * rows_p * c_pad * c_pad + 12 * rows_p * c_pad,
        transcendentals=rows_p * (c_pad + 1),
        bytes_accessed=(rows_p * c_pad * (in_bytes + out_bytes)
                        + n_row_tiles * 2 * c_pad * c_pad * 2
                        + 8 * c_pad * 4),
    )

    kernel = functools.partial(_res_block_kernel, c_true=c, c_pad=c_pad)

    out = pl.pallas_call(
        kernel,
        out_shape=jax.ShapeDtypeStruct((rows_p, c_pad), orig_dtype),
        grid_spec=pltpu.PrefetchScalarGridSpec(
            num_scalar_prefetch=0,
            grid=(n_row_tiles, n_strips),
            in_specs=[
                pl.BlockSpec((tm_eff, c_pad), lambda i, j: (i, 0)),  # x rows
                pl.BlockSpec((1, c_pad), lambda i, j: (0, 0)),       # ln gamma
                pl.BlockSpec((1, c_pad), lambda i, j: (0, 0)),       # ln beta
                pl.BlockSpec((c_pad, tn), lambda i, j: (0, j)),      # fc1 W strip
                pl.BlockSpec((1, tn), lambda i, j: (0, j)),          # fc1 bias strip
                pl.BlockSpec((tn, c_pad), lambda i, j: (j, 0)),      # fc2 W strip
                pl.BlockSpec((1, c_pad), lambda i, j: (0, 0)),       # fc2 bias
            ],
            out_specs=pl.BlockSpec((tm_eff, c_pad), lambda i, j: (i, 0)),
            scratch_shapes=[pltpu.VMEM((tm_eff, c_pad), jnp.float32),  # xn
                            pltpu.VMEM((tm_eff, c_pad), jnp.float32)], # y acc
        ),
        compiler_params=pltpu.CompilerParams(
            dimension_semantics=("parallel", "arbitrary"),
            vmem_limit_bytes=vmem_limit,
        ),
        cost_estimate=cost,
    )(x2, prepared["gamma"], prepared["beta"], prepared["w1"],
      prepared["b1"], prepared["w2"], prepared["b2"])

    out = out[:rows, :c]
    return out.reshape(orig_shape)


def init_params(key, channels):
    k1, k2, k3, k4 = jax.random.split(key, 4)
    bound = 1.0 / math.sqrt(channels)
    return {
        # nn.LayerNorm default init: weight=1, bias=0
        "ln_w": jnp.ones((channels,), jnp.float32),
        "ln_b": jnp.zeros((channels,), jnp.float32),
        # nn.Linear default init: uniform(-1/sqrt(in), 1/sqrt(in)), (out, in)
        "fc1_w": jax.random.uniform(k1, (channels, channels), jnp.float32,
                                    -bound, bound),
        "fc1_b": jax.random.uniform(k2, (channels,), jnp.float32, -bound, bound),
        "fc2_w": jax.random.uniform(k3, (channels, channels), jnp.float32,
                                    -bound, bound),
        "fc2_b": jax.random.uniform(k4, (channels,), jnp.float32, -bound, bound),
    }


def _reference(x, params):
    """Pure-JAX f32 reference mirroring the PyTorch forward (exact erf GELU)."""
    mean = jnp.mean(x, axis=-1, keepdims=True)
    var = jnp.mean((x - mean) ** 2, axis=-1, keepdims=True)
    xn = (x - mean) / jnp.sqrt(var + LN_EPS)
    xn = xn * params["ln_w"] + params["ln_b"]
    h = xn @ params["fc1_w"].T + params["fc1_b"]
    h = 0.5 * h * (1.0 + lax.erf(h / math.sqrt(2.0)))
    y = h @ params["fc2_w"].T + params["fc2_b"]
    return xn + y


if __name__ == "__main__":
    key = jax.random.PRNGKey(0)
    k1, k2, k3, k4 = jax.random.split(key, 4)

    # Tolerance covers bf16 MXU operands + tanh-approx GELU vs exact-erf f32.
    ATOL = RTOL = 5e-2

    # Case 1: lane-dense channels, weights resident (single strip), params
    # prepared once and reused (cached bf16/(in,out)/padded copies).
    batch, seq, channels = 2, 8, 256
    x = jax.random.normal(k1, (batch, seq, channels), jnp.float32)
    params = init_params(k2, channels)
    prepared = prepare_params(params, channels)
    out = jax.block_until_ready(simple_res_block(x, prepared=prepared))
    ref = _reference(x, params)
    assert out.shape == x.shape and out.dtype == x.dtype
    assert jnp.allclose(out, ref, atol=ATOL, rtol=RTOL), "mismatch (C=256)"

    # Case 1b: force the strip-mined weight path (tn=128 -> 2 inner steps) to
    # exercise the inner 'arbitrary' reduction axis and the accumulator.
    out_s = jax.block_until_ready(simple_res_block(x, prepared=prepared, tn=128))
    assert jnp.allclose(out_s, ref, atol=ATOL, rtol=RTOL), "mismatch (strips)"

    # Case 2: exercises channel padding (96 -> 128) and row padding (10 -> 16),
    # raw-params path.
    xb = jax.random.normal(k3, (2, 5, 96), jnp.float32)
    params_b = init_params(k4, 96)
    out_b = jax.block_until_ready(simple_res_block(xb, params_b))
    ref_b = _reference(xb, params_b)
    assert out_b.shape == xb.shape and out_b.dtype == xb.dtype
    assert jnp.allclose(out_b, ref_b, atol=ATOL, rtol=RTOL), "mismatch (C=96)"

    print("KERNEL_OK")
</pallas_src>

<mosaic_0001>
module attributes {stable_mosaic.version = 11 : i64} {
  func.func @_res_block_kernel(%arg0: i32, %arg1: i32, %arg2: memref<16x256xf32, #tpu.memory_space<vmem>>, %arg3: memref<1x256xf32, #tpu.memory_space<vmem>>, %arg4: memref<1x256xf32, #tpu.memory_space<vmem>>, %arg5: memref<256x256xbf16, #tpu.memory_space<vmem>>, %arg6: memref<1x256xf32, #tpu.memory_space<vmem>>, %arg7: memref<256x256xbf16, #tpu.memory_space<vmem>>, %arg8: memref<1x256xf32, #tpu.memory_space<vmem>>, %arg9: memref<16x256xf32, #tpu.memory_space<vmem>>, %arg10: memref<16x256xf32, #tpu.memory_space<vmem>>, %arg11: memref<16x256xf32, #tpu.memory_space<vmem>>) attributes {dimension_semantics = [#tpu.dimension_semantics<parallel>, #tpu.dimension_semantics<arbitrary>], iteration_bounds = array<i64: 1, 1>, scalar_prefetch = 0 : i64, scratch_operands = 2 : i64, tpu.core_type = #tpu.core_type<tc>, window_params = [{transform_indices = @transform_0, window_bounds = array<i64: 16, 256>}, {pipeline_mode = #tpu.pipeline_mode<synchronous>, transform_indices = @transform_1, window_bounds = array<i64: 1, 256>}, {pipeline_mode = #tpu.pipeline_mode<synchronous>, transform_indices = @transform_2, window_bounds = array<i64: 1, 256>}, {transform_indices = @transform_3, window_bounds = array<i64: 256, 256>}, {transform_indices = @transform_4, window_bounds = array<i64: 1, 256>}, {transform_indices = @transform_5, window_bounds = array<i64: 256, 256>}, {pipeline_mode = #tpu.pipeline_mode<synchronous>, transform_indices = @transform_6, window_bounds = array<i64: 1, 256>}, {transform_indices = @transform_7, window_bounds = array<i64: 16, 256>}]} {
    %c0_i32 = arith.constant 0 : i32
    %0 = arith.cmpi eq, %arg1, %c0_i32 : i32
    %1 = arith.extui %0 : i1 to i32
    %c0_i32_0 = arith.constant 0 : i32
    %2 = arith.cmpi ne, %1, %c0_i32_0 : i32
    scf.if %2 {
      %c0_19 = arith.constant 0 : index
      %c0_20 = arith.constant 0 : index
      %32 = vector.load %arg2[%c0_19, %c0_20] : memref<16x256xf32, #tpu.memory_space<vmem>>, vector<16x256xf32>
      %cst_21 = arith.constant dense<0.000000e+00> : vector<16xf32>
      %33 = vector.multi_reduction <add>, %32, %cst_21 [1] : vector<16x256xf32> to vector<16xf32>
      %34 = vector.shape_cast %33 : vector<16xf32> to vector<16x1xf32>
      %cst_22 = arith.constant 3.906250e-03 : f32
      %35 = vector.broadcast %cst_22 : f32 to vector<16x1xf32>
      %36 = arith.mulf %34, %35 : vector<16x1xf32>
      %37 = vector.broadcast %36 : vector<16x1xf32> to vector<16x256xf32>
      %38 = arith.subf %32, %37 : vector<16x256xf32>
      %39 = arith.mulf %38, %38 : vector<16x256xf32>
      %cst_23 = arith.constant dense<0.000000e+00> : vector<16xf32>
      %40 = vector.multi_reduction <add>, %39, %cst_23 [1] : vector<16x256xf32> to vector<16xf32>
      %41 = vector.shape_cast %40 : vector<16xf32> to vector<16x1xf32>
      %cst_24 = arith.constant 3.906250e-03 : f32
      %42 = vector.broadcast %cst_24 : f32 to vector<16x1xf32>
      %43 = arith.mulf %41, %42 : vector<16x1xf32>
      %cst_25 = arith.constant 9.99999974E-6 : f32
      %44 = vector.broadcast %cst_25 : f32 to vector<16x1xf32>
      %45 = arith.addf %43, %44 : vector<16x1xf32>
      %46 = math.rsqrt %45 : vector<16x1xf32>
      %47 = vector.broadcast %46 : vector<16x1xf32> to vector<16x256xf32>
      %48 = arith.mulf %38, %47 : vector<16x256xf32>
      %c0_26 = arith.constant 0 : index
      %c0_27 = arith.constant 0 : index
      %49 = vector.load %arg3[%c0_26, %c0_27] : memref<1x256xf32, #tpu.memory_space<vmem>>, vector<1x256xf32>
      %50 = vector.broadcast %49 : vector<1x256xf32> to vector<16x256xf32>
      %51 = arith.mulf %48, %50 : vector<16x256xf32>
      %c0_28 = arith.constant 0 : index
      %c0_29 = arith.constant 0 : index
      %52 = vector.load %arg4[%c0_28, %c0_29] : memref<1x256xf32, #tpu.memory_space<vmem>>, vector<1x256xf32>
      %53 = vector.broadcast %52 : vector<1x256xf32> to vector<16x256xf32>
      %54 = arith.addf %51, %53 : vector<16x256xf32>
      %c0_30 = arith.constant 0 : index
      %c0_31 = arith.constant 0 : index
      %55 = vector.load %arg10[%c0_30, %c0_31] : memref<16x256xf32, #tpu.memory_space<vmem>>, vector<16x256xf32>
      tpu.vector_store %arg10[%c0_30, %c0_31], %54 {strides = array<i32>} : memref<16x256xf32, #tpu.memory_space<vmem>>, vector<16x256xf32>,
      %cst_32 = arith.constant 0.000000e+00 : f32
      %56 = vector.broadcast %cst_32 : f32 to vector<16x256xf32>
      %c0_33 = arith.constant 0 : index
      %c0_34 = arith.constant 0 : index
      %57 = vector.load %arg11[%c0_33, %c0_34] : memref<16x256xf32, #tpu.memory_space<vmem>>, vector<16x256xf32>
      tpu.vector_store %arg11[%c0_33, %c0_34], %56 {strides = array<i32>} : memref<16x256xf32, #tpu.memory_space<vmem>>, vector<16x256xf32>,
    } else {
    }
    %c0 = arith.constant 0 : index
    %c0_1 = arith.constant 0 : index
    %3 = vector.load %arg10[%c0, %c0_1] : memref<16x256xf32, #tpu.memory_space<vmem>>, vector<16x256xf32>
    %4 = arith.truncf %3 : vector<16x256xf32> to vector<16x256xbf16>
    %c0_2 = arith.constant 0 : index
    %c0_3 = arith.constant 0 : index
    %5 = vector.load %arg5[%c0_2, %c0_3] : memref<256x256xbf16, #tpu.memory_space<vmem>>, vector<256x256xbf16>
    %cst = arith.constant dense<0.000000e+00> : vector<16x256xf32>
    %6 = tpu.matmul %4, %5, %cst {dimension_numbers = #tpu.dot_dimension_numbers<[1], [0], [0], [1], [0, 0, 1, 1], [], []>} : vector<16x256xbf16>, vector<256x256xbf16>, vector<16x256xf32> -> vector<16x256xf32>
    %c0_4 = arith.constant 0 : index
    %c0_5 = arith.constant 0 : index
    %7 = vector.load %arg6[%c0_4, %c0_5] : memref<1x256xf32, #tpu.memory_space<vmem>>, vector<1x256xf32>
    %8 = vector.broadcast %7 : vector<1x256xf32> to vector<16x256xf32>
    %9 = arith.addf %6, %8 : vector<16x256xf32>
    %10 = arith.mulf %9, %9 : vector<16x256xf32>
    %11 = arith.mulf %9, %10 : vector<16x256xf32>
    %cst_6 = arith.constant 4.471500e-02 : f32
    %12 = vector.broadcast %cst_6 : f32 to vector<16x256xf32>
    %13 = arith.mulf %12, %11 : vector<16x256xf32>
    %14 = arith.addf %9, %13 : vector<16x256xf32>
    %cst_7 = arith.constant 0.797884583 : f32
    %15 = vector.broadcast %cst_7 : f32 to vector<16x256xf32>
    %16 = arith.mulf %15, %14 : vector<16x256xf32>
    %17 = math.tanh %16 : vector<16x256xf32>
    %cst_8 = arith.constant 1.000000e+00 : f32
    %18 = vector.broadcast %cst_8 : f32 to vector<16x256xf32>
    %19 = arith.addf %18, %17 : vector<16x256xf32>
    %cst_9 = arith.constant 5.000000e-01 : f32
    %20 = vector.broadcast %cst_9 : f32 to vector<16x256xf32>
    %21 = arith.mulf %20, %19 : vector<16x256xf32>
    %22 = arith.mulf %9, %21 : vector<16x256xf32>
    %c0_10 = arith.constant 0 : index
    %c0_11 = arith.constant 0 : index
    %23 = vector.load %arg11[%c0_10, %c0_11] : memref<16x256xf32, #tpu.memory_space<vmem>>, vector<16x256xf32>
    %24 = arith.truncf %22 : vector<16x256xf32> to vector<16x256xbf16>
    %c0_12 = arith.constant 0 : index
    %c0_13 = arith.constant 0 : index
    %25 = vector.load %arg7[%c0_12, %c0_13] : memref<256x256xbf16, #tpu.memory_space<vmem>>, vector<256x256xbf16>
    %cst_14 = arith.constant dense<0.000000e+00> : vector<16x256xf32>
    %26 = tpu.matmul %24, %25, %cst_14 {dimension_numbers = #tpu.dot_dimension_numbers<[1], [0], [0], [1], [0, 0, 1, 1], [], []>} : vector<16x256xbf16>, vector<256x256xbf16>, vector<16x256xf32> -> vector<16x256xf32>
    %27 = arith.addf %23, %26 : vector<16x256xf32>
    %c0_15 = arith.constant 0 : index
    %c0_16 = arith.constant 0 : index
    %28 = vector.load %arg11[%c0_15, %c0_16] : memref<16x256xf32, #tpu.memory_space<vmem>>, vector<16x256xf32>
    tpu.vector_store %arg11[%c0_15, %c0_16], %27 {strides = array<i32>} : memref<16x256xf32, #tpu.memory_space<vmem>>, vector<16x256xf32>,
    %c0_i32_17 = arith.constant 0 : i32
    %29 = arith.cmpi eq, %arg1, %c0_i32_17 : i32
    %30 = arith.extui %29 : i1 to i32
    %c0_i32_18 = arith.constant 0 : i32
    %31 = arith.cmpi ne, %30, %c0_i32_18 : i32
    scf.if %31 {
      %c0_19 = arith.constant 0 : index
      %c0_20 = arith.constant 0 : index
      %32 = vector.load %arg10[%c0_19, %c0_20] : memref<16x256xf32, #tpu.memory_space<vmem>>, vector<16x256xf32>
      %c0_21 = arith.constant 0 : index
      %c0_22 = arith.constant 0 : index
      %33 = vector.load %arg11[%c0_21, %c0_22] : memref<16x256xf32, #tpu.memory_space<vmem>>, vector<16x256xf32>
      %34 = arith.addf %32, %33 : vector<16x256xf32>
      %c0_23 = arith.constant 0 : index
      %c0_24 = arith.constant 0 : index
      %35 = vector.load %arg8[%c0_23, %c0_24] : memref<1x256xf32, #tpu.memory_space<vmem>>, vector<1x256xf32>
      %36 = vector.broadcast %35 : vector<1x256xf32> to vector<16x256xf32>
      %37 = arith.addf %34, %36 : vector<16x256xf32>
      %c0_25 = arith.constant 0 : index
      %c0_26 = arith.constant 0 : index
      %38 = vector.load %arg9[%c0_25, %c0_26] : memref<16x256xf32, #tpu.memory_space<vmem>>, vector<16x256xf32>
      tpu.vector_store %arg9[%c0_25, %c0_26], %37 {strides = array<i32>} : memref<16x256xf32, #tpu.memory_space<vmem>>, vector<16x256xf32>,
    } else {
    }
    return
  }
  func.func @transform_0(%arg0: i32, %arg1: i32) -> (i32, i32) {
    %c0_i32 = arith.constant 0 : i32
    %c0_i32_0 = arith.constant 0 : i32
    return %arg0, %c0_i32 : i32, i32
  }
  func.func @transform_1(%arg0: i32, %arg1: i32) -> (i32, i32) {
    %c0_i32 = arith.constant 0 : i32
    %c0_i32_0 = arith.constant 0 : i32
    %c0_i32_1 = arith.constant 0 : i32
    return %c0_i32, %c0_i32_0 : i32, i32
  }
  func.func @transform_2(%arg0: i32, %arg1: i32) -> (i32, i32) {
    %c0_i32 = arith.constant 0 : i32
    %c0_i32_0 = arith.constant 0 : i32
    %c0_i32_1 = arith.constant 0 : i32
    return %c0_i32, %c0_i32_0 : i32, i32
  }
  func.func @transform_3(%arg0: i32, %arg1: i32) -> (i32, i32) {
    %c0_i32 = arith.constant 0 : i32
    %c0_i32_0 = arith.constant 0 : i32
    return %c0_i32, %arg1 : i32, i32
  }
  func.func @transform_4(%arg0: i32, %arg1: i32) -> (i32, i32) {
    %c0_i32 = arith.constant 0 : i32
    %c0_i32_0 = arith.constant 0 : i32
    return %c0_i32, %arg1 : i32, i32
  }
  func.func @transform_5(%arg0: i32, %arg1: i32) -> (i32, i32) {
    %c0_i32 = arith.constant 0 : i32
    %c0_i32_0 = arith.constant 0 : i32
    return %arg1, %c0_i32 : i32, i32
  }
  func.func @transform_6(%arg0: i32, %arg1: i32) -> (i32, i32) {
    %c0_i32 = arith.constant 0 : i32
    %c0_i32_0 = arith.constant 0 : i32
    %c0_i32_1 = arith.constant 0 : i32
    return %c0_i32, %c0_i32_0 : i32, i32
  }
  func.func @transform_7(%arg0: i32, %arg1: i32) -> (i32, i32) {
    %c0_i32 = arith.constant 0 : i32
    %c0_i32_0 = arith.constant 0 : i32
    return %arg0, %c0_i32 : i32, i32
  }
}

</mosaic_0001>

<bundles_post_ra>
// kernel: tpu_custom_call.1
= control target key start
LH: loop header
LB: loop body
LE: loop exit
PB: predicated region body
PF: predicated region fallthrough
CT: control target
= control target key end

     0   :  { %12 = vsyncpa [#allocation5], 0  ;;  %s1181_s0 = inlined_call_operand.hbm [shape: f32[16,256], index: 0, kind: input, shape index: {}]   ;;  %s1182_s1 = inlined_call_operand.vmem [shape: f32[1,256], index: 1, kind: input, shape index: {}]   ;;  %s1183_s2 = inlined_call_operand.vmem [shape: f32[1,256], index: 2, kind: input, shape index: {}]   ;;  %s1184_s3 = inlined_call_operand.hbm [shape: bf16[256,256], index: 3, kind: input, shape index: {}]   ;;  %s1185_s4 = inlined_call_operand.vmem [shape: f32[1,256], index: 4, kind: input, shape index: {}]   ;;  %s1186_s5 = inlined_call_operand.hbm [shape: bf16[256,256], index: 5, kind: input, shape index: {}]   ;;  %s1187_s6 = inlined_call_operand.vmem [shape: f32[1,256], index: 6, kind: input, shape index: {}]   ;;  %s1188_s7 = inlined_call_operand.hbm [shape: f32[16,256], index: 7, kind: output, shape index: {}]  }
   0x1   :  { %13 = vsyncpa [#allocation8], 0 }
   0x2   :  { %14 = vsyncpa [#allocation6], 0  ;;  %s1013_s24 = smov [#allocation7]   ;;  %s919_s28 = scalar_lea.hbm %s1184_s3, 4096 }
   0x3   :  { %s36_s25 = sshll.u32 %s1013_s24, 4  ;;  %p920_p0 = scmp.ne.s32.totalorder %s1184_s3, %s919_s28  ;;  %s37_s25 = int_to_ptr.vmem [resolvable:$true] %s36_s25 }
   0x4   :  { %p923_p1 = scmp.lt.u32.totalorder %s919_s28, %s1184_s3 }
   0x6   :  { %p925_p2 = pnand %p923_p1, %p920_p0 }
   0x8   :  { %928 = shalt.err (!%p925_p2)
}
   0x9   :  { %s929_s10 = scalar_lea.vmem %s37_s25, 4096  ;;  %p934_p4 = scmp.lt.s32.totalorder %s37_s25, %s37_s25 }
   0xa   :  { %p930_p3 = scmp.ne.s32.totalorder %s37_s25, %s929_s10  ;;  %p935_p5 = scmp.lt.s32.totalorder %s929_s10, %s929_s10 }
   0xc   :  { %p936_p6 = por %p935_p5, %p934_p4 }
   0xe   :  { %p937_p7 = pnand %p936_p6, %p930_p3 }
  0x10   :  { %940 = shalt.err (!%p937_p7)
}
  0x11   :  { %s1014_s11 = smov 128   ;;  %s1015_s12 = smov 8  }
  0x12   :  { %42 = dma.hbm_to_vmem [thread:$0]  %s1184_s3, 4096, %s37_s25, [#allocation8], %s1014_s11, %s1014_s11, %s1015_s12  }
  0x13   :  { %s1016_s15 = smov [#allocation4]   ;;  %s941_s19 = scalar_lea.hbm %s1181_s0, 512 }
  0x14   :  { %s20_s16 = sshll.u32 %s1016_s15, 4  ;;  %p942_p8 = scmp.ne.s32.totalorder %s1181_s0, %s941_s19  ;;  %s21_s16 = int_to_ptr.vmem [resolvable:$true] %s20_s16 }
  0x15   :  { %p945_p9 = scmp.lt.u32.totalorder %s941_s19, %s1181_s0 }
  0x17   :  { %p947_p10 = pnand %p945_p9, %p942_p8 }
  0x19   :  { %950 = shalt.err (!%p947_p10)
}
  0x1a   :  { %s951_s24 = scalar_lea.vmem %s21_s16, 512  ;;  %p956_p12 = scmp.lt.s32.totalorder %s21_s16, %s21_s16 }
  0x1b   :  { %p952_p11 = scmp.ne.s32.totalorder %s21_s16, %s951_s24  ;;  %p957_p13 = scmp.lt.s32.totalorder %s951_s24, %s951_s24 }
  0x1d   :  { %p958_p0 = por %p957_p13, %p956_p12 }
  0x1f   :  { %p959_p1 = pnand %p958_p0, %p952_p11 }
  0x21   :  { %962 = shalt.err (!%p959_p1)
}
  0x22   :  { %s1017_s3 = smov 256   ;;  %s1018_s25 = smov 16  }
  0x23   :  { %26 = dma.hbm_to_vmem [thread:$0]  %s1181_s0, 512, %s21_s16, [#allocation5], %s1017_s3, %s1017_s3, %s1018_s25  }
  0x24   :  { %s1019_s28 = smov [#allocation9]   ;;  %s963_s9 = scalar_lea.hbm %s1186_s5, 4096 }
  0x25   :  { %s50_s29 = sshll.u32 %s1019_s28, 4  ;;  %p964_p2 = scmp.ne.s32.totalorder %s1186_s5, %s963_s9  ;;  %s51_s29 = int_to_ptr.vmem [resolvable:$true] %s50_s29 }
  0x26   :  { %p967_p3 = scmp.lt.u32.totalorder %s963_s9, %s1186_s5 }
  0x28   :  { %p969_p4 = pnand %p967_p3, %p964_p2 }
  0x2a   :  { %972 = shalt.err (!%p969_p4)
}
  0x2b   :  { %s973_s17 = scalar_lea.vmem %s51_s29, 4096  ;;  %p978_p6 = scmp.lt.s32.totalorder %s51_s29, %s51_s29 }
  0x2c   :  { %p974_p5 = scmp.ne.s32.totalorder %s51_s29, %s973_s17  ;;  %p979_p7 = scmp.lt.s32.totalorder %s973_s17, %s973_s17 }
  0x2e   :  { %p980_p8 = por %p979_p7, %p978_p6 }
  0x30   :  { %p981_p9 = pnand %p980_p8, %p974_p5 }
  0x32   :  { %984 = shalt.err (!%p981_p9)
}
  0x33   :  { %56 = dma.hbm_to_vmem [thread:$0]  %s1186_s5, 4096, %s51_s29, [#allocation8], %s1014_s11, %s1014_s11, %s1015_s12  }
  0x34   :  { %1007 = dma.done.wait [#allocation5], 512  }
  0x35   :  { %1008 = vsyncadd [#allocation5], 4294966784 }
  0x36   :  { %1009 = dma.done.wait [#allocation8], 8192  }
  0x37   :  { %1010 = vsyncadd [#allocation8], 4294959104  ;;  %v72_v0 = vld [vmem:[#allocation4] sm:$0xff]  ;;  %v73_v1 = vld [vmem:[#allocation4 + $0x8] sm:$0xff]  ;;  %s1020_s20 = smov [#allocation10]  }
  0x38   :  { %v74_v2 = vld [vmem:[#allocation4 + $0x10] sm:$0xff]  ;;  %v76_v3 = vadd.f32 %v73_v1, %v72_v0  ;;  %v75_v4 = vld [vmem:[#allocation4 + $0x18] sm:$0xff]  ;;  %v811_v6 = vld [vmem:[#allocation7 + $0x4] ss:$8 sps:$4 sm:$0xff]   ;;  %s726_s21 = sshll.u32 %s1020_s20, 4  ;;  %s727_s21 = int_to_ptr.vmem [resolvable:$true] %s726_s21 }
  0x39   :  { %v79_v5 = vadd.f32 %v75_v4, %v74_v2  ;;  %v813_v7 = vld [vmem:[#allocation7] ss:$8 sps:$4 sm:$0xff]   ;;  %v814_v8 = vld [vmem:[#allocation7 + $0x14] ss:$8 sps:$4 sm:$0xff]   ;;  %358 = vmatprep.subr.bf16.mxu0 %v811_v6  ;;  %v816_v9 = vld [vmem:[#allocation7 + $0x10] ss:$8 sps:$4 sm:$0xff]   ;;  %v110_v6 = vlaneseq  ;;  %p990_p11 = scmp.lt.s32.totalorder %s727_s21, %s727_s21 }
  0x3a   :  { %77 = vadd.xlane.f32.xlu0 %v76_v3  ;;  %359 = vmatpush1.bf16.msra.mxu0 %v813_v7  ;;  %v817_v10 = vld [vmem:[#allocation7 + $0x24] ss:$8 sps:$4 sm:$0xff]   ;;  %v819_v11 = vld [vmem:[#allocation7 + $0x20] ss:$8 sps:$4 sm:$0xff]   ;;  %v820_v12 = vld [vmem:[#allocation7 + $0x34] ss:$8 sps:$4 sm:$0xff]  }
  0x3b   :  { %360 = vmatprep.subr.bf16.mxu0 %v814_v8  ;;  %v822_v13 = vld [vmem:[#allocation7 + $0x30] ss:$8 sps:$4 sm:$0xff]   ;;  %v823_v14 = vld [vmem:[#allocation7 + $0x44] ss:$8 sps:$4 sm:$0xff]   ;;  %v825_v15 = vld [vmem:[#allocation7 + $0x40] ss:$8 sps:$4 sm:$0xff]  }
  0x3c   :  { %v826_v16 = vld [vmem:[#allocation7 + $0x54] ss:$8 sps:$4 sm:$0xff]   ;;  %v828_v17 = vld [vmem:[#allocation7 + $0x50] ss:$8 sps:$4 sm:$0xff]   ;;  %v829_v18 = vld [vmem:[#allocation7 + $0x64] ss:$8 sps:$4 sm:$0xff]  }
  0x3d   :  { %v831_v19 = vld [vmem:[#allocation7 + $0x60] ss:$8 sps:$4 sm:$0xff]   ;;  %v832_v20 = vld [vmem:[#allocation7 + $0x74] ss:$8 sps:$4 sm:$0xff]   ;;  %v834_v21 = vld [vmem:[#allocation7 + $0x70] ss:$8 sps:$4 sm:$0xff]  }
  0x3e   :  { %80 = vadd.xlane.f32.xlu0 %v79_v5  ;;  %361 = vmatpush1.bf16.msra.mxu0 %v816_v9  ;;  %v835_v22 = vld [vmem:[#allocation7 + $0x84] ss:$8 sps:$4 sm:$0xff]   ;;  %v837_v23 = vld [vmem:[#allocation7 + $0x80] ss:$8 sps:$4 sm:$0xff]   ;;  %v838_v38 = vld [vmem:[#allocation7 + $0x94] ss:$8 sps:$4 sm:$0xff]  }
  0x3f   :  { %362 = vmatprep.subr.bf16.mxu0 %v817_v10  ;;  %v840_v39 = vld [vmem:[#allocation7 + $0x90] ss:$8 sps:$4 sm:$0xff]   ;;  %v841_v40 = vld [vmem:[#allocation7 + $0xa4] ss:$8 sps:$4 sm:$0xff]   ;;  %v843_v41 = vld [vmem:[#allocation7 + $0xa0] ss:$8 sps:$4 sm:$0xff]  }
  0x40   :  { %v844_v42 = vld [vmem:[#allocation7 + $0xb4] ss:$8 sps:$4 sm:$0xff]   ;;  %v846_v43 = vld [vmem:[#allocation7 + $0xb0] ss:$8 sps:$4 sm:$0xff]   ;;  %v847_v44 = vld [vmem:[#allocation7 + $0xc4] ss:$8 sps:$4 sm:$0xff]  }
  0x41   :  { %v849_v45 = vld [vmem:[#allocation7 + $0xc0] ss:$8 sps:$4 sm:$0xff]   ;;  %v850_v46 = vld [vmem:[#allocation7 + $0xd4] ss:$8 sps:$4 sm:$0xff]   ;;  %v852_v47 = vld [vmem:[#allocation7 + $0xd0] ss:$8 sps:$4 sm:$0xff]  }
  0x42   :  { %363 = vmatpush1.bf16.msra.mxu0 %v819_v11  ;;  %v853_v48 = vld [vmem:[#allocation7 + $0xe4] ss:$8 sps:$4 sm:$0xff]   ;;  %v855_v49 = vld [vmem:[#allocation7 + $0xe0] ss:$8 sps:$4 sm:$0xff]   ;;  %v856_v50 = vld [vmem:[#allocation7 + $0xf4] ss:$8 sps:$4 sm:$0xff]  }
  0x43   :  { %364 = vmatprep.subr.bf16.mxu0 %v820_v12  ;;  %v858_v51 = vld [vmem:[#allocation7 + $0xf0] ss:$8 sps:$4 sm:$0xff]   ;;  %v859_v52 = vld [vmem:[#allocation9 + $0x4] ss:$8 sps:$4 sm:$0xff]   ;;  %v861_v53 = vld [vmem:[#allocation9] ss:$8 sps:$4 sm:$0xff]  }
  0x44   :  { %v862_v54 = vld [vmem:[#allocation9 + $0x14] ss:$8 sps:$4 sm:$0xff]   ;;  %635 = vmatprep.subr.bf16.mxu1 %v859_v52  ;;  %v864_v55 = vld [vmem:[#allocation9 + $0x10] ss:$8 sps:$4 sm:$0xff]   ;;  %v865_v56 = vld [vmem:[#allocation9 + $0x24] ss:$8 sps:$4 sm:$0xff]  }
  0x45   :  { %636 = vmatpush1.bf16.msra.mxu1 %v861_v53  ;;  %v867_v57 = vld [vmem:[#allocation9 + $0x20] ss:$8 sps:$4 sm:$0xff]   ;;  %v868_v58 = vld [vmem:[#allocation9 + $0x34] ss:$8 sps:$4 sm:$0xff]   ;;  %v870_v59 = vld [vmem:[#allocation9 + $0x30] ss:$8 sps:$4 sm:$0xff]  }
  0x46   :  { %365 = vmatpush1.bf16.msra.mxu0 %v822_v13  ;;  %637 = vmatprep.subr.bf16.mxu1 %v862_v54  ;;  %v871_v60 = vld [vmem:[#allocation9 + $0x44] ss:$8 sps:$4 sm:$0xff]   ;;  %v873_v61 = vld [vmem:[#allocation9 + $0x40] ss:$8 sps:$4 sm:$0xff]   ;;  %v874_v62 = vld [vmem:[#allocation9 + $0x54] ss:$8 sps:$4 sm:$0xff]  }
  0x47   :  { %366 = vmatprep.subr.bf16.mxu0 %v823_v14  ;;  %v876_v63 = vld [vmem:[#allocation9 + $0x50] ss:$8 sps:$4 sm:$0xff]   ;;  %v111_v9 = vshrl.u32 %v110_v6, 7  ;;  %v108_v12 = vld [vmem:[%s1182_s1] sm:$0x3] }
  0x48   :  { %v186_v52 = vld [vmem:[%s1185_s4] sm:$0x3] }
  0x49   :  { %638 = vmatpush1.bf16.msra.mxu1 %v864_v55  ;;  %v1122_v10 = vsub.s32 0, %v111_v9  ;;  %v1124_v11 = vsub.s32 1, %v111_v9 }
  0x4a   :  { %367 = vmatpush1.bf16.msra.mxu0 %v825_v15  ;;  %639 = vmatprep.subr.bf16.mxu1 %v865_v56 }
  0x4b   :  { %368 = vmatprep.subr.bf16.mxu0 %v826_v16  ;;  %v113_v15 = vrot.slane %v108_v12, %v1122_v10  ;;  %v117_v16 = vrot.slane %v108_v12, %v1124_v11  ;;  %v191_v53 = vrot.slane %v186_v52, %v1122_v10  ;;  %v195_v54 = vrot.slane %v186_v52, %v1124_v11 }
  0x4d   :  { %640 = vmatpush1.bf16.msra.mxu1 %v867_v57 }
  0x4e   :  { %369 = vmatpush1.bf16.msra.mxu0 %v828_v17  ;;  %641 = vmatprep.subr.bf16.mxu1 %v868_v58  ;;  %v124_v17 = vld [vmem:[%s1183_s2] sm:$0x3] }
  0x4f   :  { %370 = vmatprep.subr.bf16.mxu0 %v829_v18 }
  0x51   :  { %642 = vmatpush1.bf16.msra.mxu1 %v870_v59 }
  0x52   :  { %371 = vmatpush1.bf16.msra.mxu0 %v831_v19  ;;  %643 = vmatprep.subr.bf16.mxu1 %v871_v60 }
  0x53   :  { %372 = vmatprep.subr.bf16.mxu0 %v832_v20  ;;  %v129_v20 = vrot.slane %v124_v17, %v1122_v10 }
  0x55   :  { %644 = vmatpush1.bf16.msra.mxu1 %v873_v61 }
  0x56   :  { %373 = vmatpush1.bf16.msra.mxu0 %v834_v21  ;;  %645 = vmatprep.subr.bf16.mxu1 %v874_v62  ;;  %v133_v21 = vrot.slane %v124_v17, %v1124_v11 }
  0x57   :  { %374 = vmatprep.subr.bf16.mxu0 %v835_v22 }
  0x59   :  { %646 = vmatpush1.bf16.msra.mxu1 %v876_v63 }
  0x5a   :  { %375 = vmatpush1.bf16.msra.mxu0 %v837_v23 }
  0x5b   :  { %376 = vmatprep.subr.bf16.mxu0 %v838_v38  ;;  %v886_v38 = vld [vmem:[#allocation9 + $0x94] ss:$8 sps:$4 sm:$0xff]  }
  0x5e   :  { %377 = vmatpush1.bf16.msra.mxu0 %v840_v39  ;;  %v888_v39 = vld [vmem:[#allocation9 + $0x90] ss:$8 sps:$4 sm:$0xff]  }
  0x5f   :  { %378 = vmatprep.subr.bf16.mxu0 %v841_v40  ;;  %v889_v40 = vld [vmem:[#allocation9 + $0xa4] ss:$8 sps:$4 sm:$0xff]  }
  0x62   :  { %379 = vmatpush1.bf16.msra.mxu0 %v843_v41  ;;  %v891_v41 = vld [vmem:[#allocation9 + $0xa0] ss:$8 sps:$4 sm:$0xff]  }
  0x63   :  { %380 = vmatprep.subr.bf16.mxu0 %v844_v42  ;;  %v892_v42 = vld [vmem:[#allocation9 + $0xb4] ss:$8 sps:$4 sm:$0xff]  }
  0x66   :  { %381 = vmatpush1.bf16.msra.mxu0 %v846_v43  ;;  %v894_v43 = vld [vmem:[#allocation9 + $0xb0] ss:$8 sps:$4 sm:$0xff]  }
  0x67   :  { %382 = vmatprep.subr.bf16.mxu0 %v847_v44  ;;  %v895_v44 = vld [vmem:[#allocation9 + $0xc4] ss:$8 sps:$4 sm:$0xff]  }
  0x6a   :  { %383 = vmatpush1.bf16.msra.mxu0 %v849_v45  ;;  %v897_v45 = vld [vmem:[#allocation9 + $0xc0] ss:$8 sps:$4 sm:$0xff]  }
  0x6b   :  { %384 = vmatprep.subr.bf16.mxu0 %v850_v46  ;;  %v898_v46 = vld [vmem:[#allocation9 + $0xd4] ss:$8 sps:$4 sm:$0xff]  }
  0x6e   :  { %385 = vmatpush1.bf16.msra.mxu0 %v852_v47  ;;  %v900_v47 = vld [vmem:[#allocation9 + $0xd0] ss:$8 sps:$4 sm:$0xff]  }
  0x6f   :  { %386 = vmatprep.subr.bf16.mxu0 %v853_v48  ;;  %v901_v48 = vld [vmem:[#allocation9 + $0xe4] ss:$8 sps:$4 sm:$0xff]  }
  0x72   :  { %387 = vmatpush1.bf16.msra.mxu0 %v855_v49  ;;  %v903_v49 = vld [vmem:[#allocation9 + $0xe0] ss:$8 sps:$4 sm:$0xff]  }
  0x73   :  { %388 = vmatprep.subr.bf16.mxu0 %v856_v50  ;;  %v904_v50 = vld [vmem:[#allocation9 + $0xf4] ss:$8 sps:$4 sm:$0xff]  }
  0x76   :  { %389 = vmatpush1.bf16.msra.mxu0 %v858_v51  ;;  %v906_v51 = vld [vmem:[#allocation9 + $0xf0] ss:$8 sps:$4 sm:$0xff]  }
  0xc7   :  { %v78_v24 = vpop.xlane.xlu0 %77 }
  0xc8   :  { %v82_v25 = vmul.f32 0.00390625, %v78_v24 }
  0xca   :  { %v1106_v26 = vsub.f32 %v72_v0, %v82_v25  ;;  %v1108_v27 = vsub.f32 %v73_v1, %v82_v25  ;;  %v877_v0 = vld [vmem:[#allocation9 + $0x64] ss:$8 sps:$4 sm:$0xff]   ;;  %v879_v1 = vld [vmem:[#allocation9 + $0x60] ss:$8 sps:$4 sm:$0xff]  }
  0xcb   :  { %v81_v28 = vpop.xlane.xlu0 %80  ;;  %647 = vmatprep.subr.bf16.mxu1 %v877_v0 }
  0xcc   :  { %v83_v29 = vmul.f32 0.00390625, %v81_v28  ;;  %v88_v30 = vmul.f32 %v1106_v26, %v1106_v26  ;;  %v89_v31 = vmul.f32 %v1108_v27, %v1108_v27  ;;  %648 = vmatpush1.bf16.msra.mxu1 %v879_v1 }
  0xce   :  { %v1114_v32 = vsub.f32 %v74_v2, %v83_v29  ;;  %v1116_v33 = vsub.f32 %v75_v4, %v83_v29  ;;  %v92_v34 = vadd.f32 %v89_v31, %v88_v30 }
  0xd0   :  { %93 = vadd.xlane.f32.xlu1 %v92_v34  ;;  %v90_v35 = vmul.f32 %v1114_v32, %v1114_v32  ;;  %v91_v36 = vmul.f32 %v1116_v33, %v1116_v33 }
  0xd2   :  { %v95_v37 = vadd.f32 %v91_v36, %v90_v35  ;;  %v882_v35 = vld [vmem:[#allocation9 + $0x70] ss:$8 sps:$4 sm:$0xff]   ;;  %v883_v36 = vld [vmem:[#allocation9 + $0x84] ss:$8 sps:$4 sm:$0xff]  }
  0xd4   :  { %96 = vadd.xlane.f32.xlu1 %v95_v37  ;;  %v885_v37 = vld [vmem:[#allocation9 + $0x80] ss:$8 sps:$4 sm:$0xff]  }
 0x15d   :  { %v94_v2 = vpop.xlane.xlu1 %93 }
 0x15e   :  { %v98_v3 = vmul.f32 0.00390625, %v94_v2 }
 0x160   :  { %v100_v4 = vadd.f32 1e-05, %v98_v3 }
 0x161   :  { %v97_v5 = vpop.xlane.xlu1 %96 }
 0x162   :  { %907 = vrsqrt.f32 %v100_v4  ;;  %v99_v7 = vmul.f32 0.00390625, %v97_v5 }
 0x164   :  { %v101_v8 = vadd.f32 1e-05, %v99_v7 }
 0x166   :  { %909 = vrsqrt.f32 %v101_v8 }
 0x16c   :  { %v908_v13 = vpop.eup %907 }
 0x16d   :  { %v105_v14 = vmul.f32 %v908_v13, %v1108_v27  ;;  %v104_v18 = vmul.f32 %v908_v13, %v1106_v26 }
 0x16f   :  { %v121_v23 = vmul.f32 %v117_v16, %v105_v14  ;;  %v120_v25 = vmul.f32 %v113_v15, %v104_v18 }
 0x170   :  { %v910_v19 = vpop.eup %909 }
 0x171   :  { %v107_v22 = vmul.f32 %v910_v19, %v1116_v33  ;;  %v106_v24 = vmul.f32 %v910_v19, %v1114_v32  ;;  %v1140_v29 = vadd.f32 %v133_v21, %v121_v23  ;;  %v1144_v31 = vadd.f32 %v129_v20, %v120_v25  ;;  %v880_v32 = vld [vmem:[#allocation9 + $0x74] ss:$8 sps:$4 sm:$0xff]  }
 0x172   :  { %649 = vmatprep.subr.bf16.mxu1 %v880_v32 }
 0x173   :  { %v123_v27 = vmul.f32 %v117_v16, %v107_v22  ;;  %v122_v28 = vmul.f32 %v113_v15, %v106_v24  ;;  %650 = vmatpush1.bf16.msra.mxu1 %v882_v35 }
 0x174   :  { %651 = vmatprep.subr.bf16.mxu1 %v883_v36 }
 0x175   :  { %v1142_v30 = vadd.f32 %v133_v21, %v123_v27  ;;  %v1146_v26 = vadd.f32 %v129_v20, %v122_v28 }
 0x177   :  { %v153_v34 = vpack.c.bf16 %v1142_v30, %v1140_v29  ;;  %v152_v33 = vpack.c.bf16 %v1146_v26, %v1144_v31  ;;  %652 = vmatpush1.bf16.msra.mxu1 %v885_v37 }
 0x178   :  { %653 = vmatprep.subr.bf16.mxu1 %v886_v38 }
 0x179   :  { %390 = vmatprep.mubr.bf16.mxu0 %v153_v34 }
 0x17a   :  { %391 = vmatmul.mubr.bf16.vlgmr.msra.gmra.mrb[0].mxu0 %v152_v33 }
 0x17b   :  { %654 = vmatpush1.bf16.msra.mxu1 %v888_v39 }
 0x17c   :  { %655 = vmatprep.subr.bf16.mxu1 %v889_v40 }
 0x17f   :  { %656 = vmatpush1.bf16.msra.mxu1 %v891_v41 }
 0x180   :  { %657 = vmatprep.subr.bf16.mxu1 %v892_v42 }
 0x183   :  { %658 = vmatpush1.bf16.msra.mxu1 %v894_v43  ;;  %v701_v43 = vld [vmem:[%s1187_s6] sm:$0x3]  ;;  %s985_s6 = scalar_lea.vmem %s727_s21, 512 }
 0x184   :  { %659 = vmatprep.subr.bf16.mxu1 %v895_v44  ;;  %v706_v44 = vrot.slane %v701_v43, %v1122_v10  ;;  %p986_p10 = scmp.ne.s32.totalorder %s727_s21, %s985_s6  ;;  %p991_p12 = scmp.lt.s32.totalorder %s985_s6, %s985_s6 }
 0x186   :  { %p992_p13 = por %p991_p12, %p990_p11 }
 0x187   :  { %660 = vmatpush1.bf16.msra.mxu1 %v897_v45 }
 0x188   :  { %661 = vmatprep.subr.bf16.mxu1 %v898_v46  ;;  %v710_v46 = vrot.slane %v701_v43, %v1124_v11  ;;  %p993_p0 = pnand %p992_p13, %p986_p10 }
 0x18b   :  { %662 = vmatpush1.bf16.msra.mxu1 %v900_v47 }
 0x18c   :  { %663 = vmatprep.subr.bf16.mxu1 %v901_v48 }
 0x18f   :  { %664 = vmatpush1.bf16.msra.mxu1 %v903_v49 }
 0x190   :  { %665 = vmatprep.subr.bf16.mxu1 %v904_v50 }
 0x193   :  { %666 = vmatpush1.bf16.msra.mxu1 %v906_v51 }
 0x24d   :  { %v392_v55 = vpop.f32.mrb[0].mxu0 }
 0x24e   :  { %v393_v56 = vadd.f32 %v392_v55, %v191_v53  ;;  %v394_v57 = vpop.f32.mrb[1].mxu0 }
 0x24f   :  { %v395_v58 = vadd.f32 %v394_v57, %v195_v54  ;;  %v396_v59 = vpop.f32.mrb[2].mxu0 }
 0x250   :  { %v401_v60 = vmul.f32 %v393_v56, %v393_v56  ;;  %v397_v61 = vadd.f32 %v396_v59, %v191_v53  ;;  %v398_v62 = vpop.f32.mrb[3].mxu0 }
 0x251   :  { %v402_v63 = vmul.f32 %v395_v58, %v395_v58  ;;  %v399_v0 = vadd.f32 %v398_v62, %v195_v54 }
 0x252   :  { %v405_v1 = vmul.f32 %v401_v60, %v393_v56  ;;  %v403_v2 = vmul.f32 %v397_v61, %v397_v61 }
 0x253   :  { %v406_v3 = vmul.f32 %v402_v63, %v395_v58  ;;  %v404_v4 = vmul.f32 %v399_v0, %v399_v0 }
 0x254   :  { %v409_v5 = vmul.f32 0.044715, %v405_v1  ;;  %v407_v6 = vmul.f32 %v403_v2, %v397_v61 }
 0x255   :  { %v410_v7 = vmul.f32 0.044715, %v406_v3  ;;  %v408_v8 = vmul.f32 %v404_v4, %v399_v0 }
 0x256   :  { %v413_v9 = vadd.f32 %v409_v5, %v393_v56  ;;  %v411_v12 = vmul.f32 0.044715, %v407_v6 }
 0x257   :  { %v412_v13 = vmul.f32 0.044715, %v408_v8  ;;  %v414_v14 = vadd.f32 %v410_v7, %v395_v58 }
 0x258   :  { %v417_v15 = vmul.f32 0.7978846, %v413_v9  ;;  %v415_v16 = vadd.f32 %v411_v12, %v397_v61 }
 0x259   :  { %v416_v17 = vadd.f32 %v412_v13, %v399_v0  ;;  %v418_v18 = vmul.f32 0.7978846, %v414_v14 }
 0x25a   :  { %911 = vtanh.f32 %v417_v15  ;;  %v419_v19 = vmul.f32 0.7978846, %v415_v16 }
 0x25b   :  { %v420_v20 = vmul.f32 0.7978846, %v416_v17  ;;  %913 = vtanh.f32 %v418_v18 }
 0x25c   :  { %915 = vtanh.f32 %v419_v19 }
 0x25d   :  { %917 = vtanh.f32 %v420_v20 }
 0x264   :  { %v912_v21 = vpop.eup %911 }
 0x265   :  { %v914_v22 = vpop.eup %913  ;;  %v425_v23 = vadd.f32 1.0, %v912_v21 }
 0x266   :  { %v916_v24 = vpop.eup %915  ;;  %v426_v25 = vadd.f32 1.0, %v914_v22 }
 0x267   :  { %v918_v27 = vpop.eup %917  ;;  %v427_v28 = vadd.f32 1.0, %v916_v24  ;;  %v429_v34 = vmul.f32 0.5, %v425_v23 }
 0x268   :  { %v428_v33 = vadd.f32 1.0, %v918_v27  ;;  %v430_v32 = vmul.f32 0.5, %v426_v25 }
 0x269   :  { %v431_v35 = vmul.f32 0.5, %v427_v28  ;;  %v433_v37 = vmul.f32 %v429_v34, %v393_v56 }
 0x26a   :  { %v432_v36 = vmul.f32 0.5, %v428_v33  ;;  %v434_v39 = vmul.f32 %v430_v32, %v395_v58 }
 0x26b   :  { %v435_v38 = vmul.f32 %v431_v35, %v397_v61 }
 0x26c   :  { %v436_v40 = vmul.f32 %v432_v36, %v399_v0 }
 0x26d   :  { %v441_v41 = vpack.c.bf16 %v435_v38, %v433_v37 }
 0x26e   :  { %v442_v42 = vpack.c.bf16 %v436_v40, %v434_v39 }
 0x270   :  { %667 = vmatprep.mubr.bf16.mxu1 %v442_v42 }
 0x271   :  { %668 = vmatmul.mubr.bf16.vlgmr.msra.gmra.mrb[0].mxu1 %v441_v41 }
 0x344   :  { %v669_v45 = vpop.f32.mrb[0].mxu1 }
 0x345   :  { %v697_v47 = vadd.f32 %v669_v45, %v1144_v31  ;;  %v671_v48 = vpop.f32.mrb[1].mxu1 }
 0x346   :  { %v698_v49 = vadd.f32 %v671_v48, %v1140_v29  ;;  %v673_v50 = vpop.f32.mrb[2].mxu1 }
 0x347   :  { %v713_v51 = vadd.f32 %v706_v44, %v697_v47  ;;  %v699_v52 = vadd.f32 %v673_v50, %v1146_v26  ;;  %v675_v53 = vpop.f32.mrb[3].mxu1 }
 0x348   :  { %v714_v54 = vadd.f32 %v710_v46, %v698_v49  ;;  %v700_v55 = vadd.f32 %v675_v53, %v1142_v30 }
 0x349   :  { %717 = vst [vmem:[#allocation10] sm:$0xff] %v713_v51  ;;  %v715_v10 = vadd.f32 %v706_v44, %v699_v52 }
 0x34a   :  { %718 = vst [vmem:[#allocation10 + $0x8] sm:$0xff] %v714_v54  ;;  %v716_v56 = vadd.f32 %v710_v46, %v700_v55 }
 0x34b   :  { %719 = vst [vmem:[#allocation10 + $0x10] sm:$0xff] %v715_v10 }
 0x34c   :  { %720 = vst [vmem:[#allocation10 + $0x18] sm:$0xff] %v716_v56 }
 0x34d   :  { %996 = shalt.err (!%p993_p0)
}
 0x34e   :  { %s997_s24 = scalar_lea.hbm %s1188_s7, 512 }
 0x34f   :  { %p998_p1 = scmp.ne.s32.totalorder %s1188_s7, %s997_s24  ;;  %p1001_p2 = scmp.lt.u32.totalorder %s997_s24, %s1188_s7 }
 0x351   :  { %p1003_p3 = pnand %p1001_p2, %p998_p1 }
 0x353   :  { %1006 = shalt.err (!%p1003_p3)
}
 0x354   :  { %732 = dma.vmem_to_hbm [thread:$0]  %s727_s21, 512, %s1188_s7, [#allocation6], %s1017_s3, %s1017_s3, %s1018_s25  }
 0x355   :  { %1011 = dma.done.wait [#allocation6], 512  }
 0x356   :  { %1012 = vsyncadd [#allocation6], 4294966784 }
 0x357   :  { %736 = vsyncpa [#allocation5], 1 }
 0x358   :  { %737 = vsyncpa [#allocation8], 1 }
 0x359   :  { %738 = vsyncpa [#allocation6], 1 }

</bundles_post_ra>
